<compile_context>
chip_gen: v5e
topology: v5e:2x2
jax: 0.10.0
libtpu: 0.0.40
codegen_flags: <defaults>
</compile_context>

<pallas_src>
import jax
import jax.numpy as jnp
from jax.experimental import pallas as pl
from jax.experimental.pallas import tpu as pltpu


def _largest_divisor_leq(n, cap):
    cap = max(1, min(n, cap))
    for d in range(cap, 0, -1):
        if n % d == 0:
            return d
    return 1


def _vmem_capacity_bytes():
    # Per-generation VMEM capacity (128 MiB on v5e/v6e, 64 MiB on v7x).
    try:
        info = pltpu.get_tpu_info()
        cap = getattr(info, "vmem_capacity_bytes", None)
        if cap:
            return int(cap)
    except Exception:
        pass
    return 64 << 20  # conservative fallback (smallest across generations)


def _node_linear_kernel(x_ref, w_ref, b_ref, o_ref):
    # x_ref: (B, Nb, tile_t, Din)   activations, original [B,N,T,Din] layout
    # w_ref: (Nb, Din, Dout)        per-node weights (resident across the t axis)
    # b_ref: (Nb, 1, Dout)          per-node bias
    # o_ref: (B, Nb, tile_t, Dout)  written directly in the final layout (unpadded)
    B = x_ref.shape[0]
    Nb = x_ref.shape[1]
    for i in range(Nb):                       # static unroll over nodes in this block
        w_i = w_ref[i]                        # (Din, Dout), loaded once, reused over B
        b_i = b_ref[i]                        # (1, Dout)
        if B <= 16:
            # small batch: static unroll (LLO sees everything, no loop overhead)
            for b in range(B):
                y = jnp.dot(x_ref[b, i], w_i, preferred_element_type=jnp.float32)
                o_ref[b, i] = (y + b_i).astype(o_ref.dtype)
        else:
            # large batch: bounded unroll so live ranges stay small (no spills)
            def body(b, carry, _i=i, _w=w_i, _b=b_i):
                y = jnp.dot(x_ref[b, _i], _w, preferred_element_type=jnp.float32)
                o_ref[b, _i] = (y + _b).astype(o_ref.dtype)
                return carry
            jax.lax.fori_loop(0, B, body, 0, unroll=8)
    # NOTE: folding (B, T) into one big MXU M dim would require exactly the
    # node-major relayout we removed; the op is HBM-bandwidth-bound for the
    # small per-node Din/Dout this module uses, so the small matmuls are fine.


def my_linear(x, weights, biases):
    """x: [B, N, T, Din]; weights: [N, Din, Dout] (= W_n^T); biases: [N, Dout]."""
    B, N, T, Din = x.shape
    Dout = weights.shape[-1]
    itemsize = jnp.dtype(x.dtype).itemsize

    # --- per-generation VMEM budget ---------------------------------------
    cap = _vmem_capacity_bytes()
    vmem_limit = int(cap * 0.8)          # raised scoped-VMEM limit, with headroom
    budget = int(cap * 0.55)             # working-set budget used for block sizing

    # --- node batching (amortize per-step overhead), capped unroll ---------
    unroll_cap = 32
    nb_cap = max(1, min(8, unroll_cap // max(1, B)))
    Nb = _largest_divisor_leq(N, nb_cap)
    # v7x megacore: keep >= 2 steps on the node (leading, parallel) axis.
    if N >= 2 and N // Nb < 2:
        Nb = _largest_divisor_leq(N, max(1, Nb // 2))
    # TODO(synk): for prime N with many nodes, pad the node dim with zero-weight
    # nodes (or use a cdiv grid) so Nb can stay > 1.

    # --- time tiling: full T, or a multiple-of-8 divisor of T if needed ----
    tt_cands = [T] + sorted((d for d in range(8, T, 8) if T % d == 0), reverse=True)

    def _blk_bytes(nb, tt):
        xo = B * nb * tt * (Din + Dout)      # x + out blocks (double-buffered)
        wb = nb * (Din * Dout + Dout)        # weight + bias blocks
        return 2 * itemsize * (xo + wb)

    tile_t = T
    for tt in tt_cands:                      # shrink tile_t first (keeps weight reuse)
        tile_t = tt
        if _blk_bytes(Nb, tile_t) <= budget:
            break
    while _blk_bytes(Nb, tile_t) > budget and Nb > 1:
        Nb = _largest_divisor_leq(N, Nb // 2)
    # TODO(synk): for very large Din/Dout add a K (and Dout) grid axis marked
    # "arbitrary" with an f32 VMEM accumulator + pl.when init/finalize instead
    # of collapsing tile_t/Nb.

    grid = (N // Nb, T // tile_t)
    b3 = biases.reshape(N, 1, Dout)          # tiny; keeps bias block (Nb,1,Dout) legal

    return pl.pallas_call(
        _node_linear_kernel,
        out_shape=jax.ShapeDtypeStruct((B, N, T, Dout), x.dtype),
        grid_spec=pltpu.PrefetchScalarGridSpec(
            num_scalar_prefetch=0,
            grid=grid,
            in_specs=[
                # activations: read straight from the original [B,N,T,Din] layout
                pl.BlockSpec((B, Nb, tile_t, Din), lambda n, t: (0, n, t, 0)),
                # weights / bias: block index depends only on n -> resident
                # across the inner t axis
                pl.BlockSpec((Nb, Din, Dout), lambda n, t: (n, 0, 0)),
                pl.BlockSpec((Nb, 1, Dout), lambda n, t: (n, 0, 0)),
            ],
            # output written directly in the final [B,N,T,Dout] layout, unpadded
            out_specs=pl.BlockSpec((B, Nb, tile_t, Dout), lambda n, t: (0, n, t, 0)),
        ),
        compiler_params=pltpu.CompilerParams(
            # node axis first so a v7x megacore split lands on it (each core
            # DMAs only its own nodes' weights); neutral on single-TC v5e/v6e.
            dimension_semantics=("parallel", "parallel"),
            vmem_limit_bytes=vmem_limit,
        ),
    )(x, weights, b3)


if __name__ == "__main__":
    # Small shapes consistent with the module: x is [B, num_nodes, T, input_dim]
    B, N, T, Din, Dout = 2, 4, 8, 16, 32

    key = jax.random.PRNGKey(0)
    kx, kw, kb = jax.random.split(key, 3)

    x = jax.random.normal(kx, (B, N, T, Din), dtype=jnp.float32)
    # Deterministic parameter init (nn.Linear-style scale), one Linear per node.
    bound = 1.0 / (Din ** 0.5)
    weights = jax.random.uniform(
        kw, (N, Din, Dout), dtype=jnp.float32, minval=-bound, maxval=bound
    )
    biases = jax.random.uniform(
        kb, (N, Dout), dtype=jnp.float32, minval=-bound, maxval=bound
    )

    out = my_linear(x, weights, biases)
    out = jax.block_until_ready(out)

    # Pure-JAX reference of the PyTorch forward.
    ref = jnp.einsum("bntd,nde->bnte", x, weights) + biases[None, :, None, :]
    assert out.shape == (B, N, T, Dout)
    assert jnp.allclose(out, ref, atol=1e-5, rtol=1e-5)

    print("KERNEL_OK")
</pallas_src>

<mosaic_0001>
module attributes {stable_mosaic.version = 11 : i64} {
  func.func @_node_linear_kernel(%arg0: i32, %arg1: i32, %arg2: memref<2x2x8x16xf32, #tpu.memory_space<vmem>>, %arg3: memref<2x16x32xf32, #tpu.memory_space<vmem>>, %arg4: memref<2x1x32xf32, #tpu.memory_space<vmem>>, %arg5: memref<2x2x8x32xf32, #tpu.memory_space<vmem>>) attributes {dimension_semantics = [#tpu.dimension_semantics<parallel>, #tpu.dimension_semantics<parallel>], iteration_bounds = array<i64: 2, 1>, scalar_prefetch = 0 : i64, scratch_operands = 0 : i64, tpu.core_type = #tpu.core_type<tc>, window_params = [{transform_indices = @transform_0, window_bounds = array<i64: 2, 2, 8, 16>}, {transform_indices = @transform_1, window_bounds = array<i64: 2, 16, 32>}, {transform_indices = @transform_2, window_bounds = array<i64: 2, 1, 32>}, {transform_indices = @transform_3, window_bounds = array<i64: 2, 2, 8, 32>}]} {
    %c0 = arith.constant 0 : index
    %c0_0 = arith.constant 0 : index
    %c0_1 = arith.constant 0 : index
    %0 = vector.load %arg3[%c0, %c0_0, %c0_1] : memref<2x16x32xf32, #tpu.memory_space<vmem>>, vector<1x16x32xf32>
    %1 = vector.shape_cast %0 : vector<1x16x32xf32> to vector<16x32xf32>
    %c0_2 = arith.constant 0 : index
    %c0_3 = arith.constant 0 : index
    %c0_4 = arith.constant 0 : index
    %2 = vector.load %arg4[%c0_2, %c0_3, %c0_4] : memref<2x1x32xf32, #tpu.memory_space<vmem>>, vector<1x1x32xf32>
    %3 = vector.shape_cast %2 : vector<1x1x32xf32> to vector<1x32xf32>
    %c0_5 = arith.constant 0 : index
    %c0_6 = arith.constant 0 : index
    %c0_7 = arith.constant 0 : index
    %c0_8 = arith.constant 0 : index
    %4 = vector.load %arg2[%c0_5, %c0_6, %c0_7, %c0_8] : memref<2x2x8x16xf32, #tpu.memory_space<vmem>>, vector<1x1x8x16xf32>
    %5 = vector.shape_cast %4 : vector<1x1x8x16xf32> to vector<8x16xf32>
    %cst = arith.constant dense<0.000000e+00> : vector<8x32xf32>
    %6 = tpu.matmul %5, %1, %cst {dimension_numbers = #tpu.dot_dimension_numbers<[1], [0], [0], [1], [0, 0, 1, 1], [], []>} : vector<8x16xf32>, vector<16x32xf32>, vector<8x32xf32> -> vector<8x32xf32>
    %7 = vector.broadcast %3 : vector<1x32xf32> to vector<8x32xf32>
    %8 = arith.addf %6, %7 : vector<8x32xf32>
    %c0_9 = arith.constant 0 : index
    %c0_10 = arith.constant 0 : index
    %c0_11 = arith.constant 0 : index
    %c0_12 = arith.constant 0 : index
    %9 = vector.load %arg5[%c0_9, %c0_10, %c0_11, %c0_12] : memref<2x2x8x32xf32, #tpu.memory_space<vmem>>, vector<1x1x8x32xf32>
    %10 = vector.shape_cast %9 : vector<1x1x8x32xf32> to vector<8x32xf32>
    %11 = vector.shape_cast %8 : vector<8x32xf32> to vector<1x1x8x32xf32>
    tpu.vector_store %arg5[%c0_9, %c0_10, %c0_11, %c0_12], %11 {strides = array<i32>} : memref<2x2x8x32xf32, #tpu.memory_space<vmem>>, vector<1x1x8x32xf32>,
    %c1 = arith.constant 1 : index
    %c0_13 = arith.constant 0 : index
    %c0_14 = arith.constant 0 : index
    %c0_15 = arith.constant 0 : index
    %12 = vector.load %arg2[%c1, %c0_13, %c0_14, %c0_15] : memref<2x2x8x16xf32, #tpu.memory_space<vmem>>, vector<1x1x8x16xf32>
    %13 = vector.shape_cast %12 : vector<1x1x8x16xf32> to vector<8x16xf32>
    %cst_16 = arith.constant dense<0.000000e+00> : vector<8x32xf32>
    %14 = tpu.matmul %13, %1, %cst_16 {dimension_numbers = #tpu.dot_dimension_numbers<[1], [0], [0], [1], [0, 0, 1, 1], [], []>} : vector<8x16xf32>, vector<16x32xf32>, vector<8x32xf32> -> vector<8x32xf32>
    %15 = vector.broadcast %3 : vector<1x32xf32> to vector<8x32xf32>
    %16 = arith.addf %14, %15 : vector<8x32xf32>
    %c1_17 = arith.constant 1 : index
    %c0_18 = arith.constant 0 : index
    %c0_19 = arith.constant 0 : index
    %c0_20 = arith.constant 0 : index
    %17 = vector.load %arg5[%c1_17, %c0_18, %c0_19, %c0_20] : memref<2x2x8x32xf32, #tpu.memory_space<vmem>>, vector<1x1x8x32xf32>
    %18 = vector.shape_cast %17 : vector<1x1x8x32xf32> to vector<8x32xf32>
    %19 = vector.shape_cast %16 : vector<8x32xf32> to vector<1x1x8x32xf32>
    tpu.vector_store %arg5[%c1_17, %c0_18, %c0_19, %c0_20], %19 {strides = array<i32>} : memref<2x2x8x32xf32, #tpu.memory_space<vmem>>, vector<1x1x8x32xf32>,
    %c1_21 = arith.constant 1 : index
    %c0_22 = arith.constant 0 : index
    %c0_23 = arith.constant 0 : index
    %20 = vector.load %arg3[%c1_21, %c0_22, %c0_23] : memref<2x16x32xf32, #tpu.memory_space<vmem>>, vector<1x16x32xf32>
    %21 = vector.shape_cast %20 : vector<1x16x32xf32> to vector<16x32xf32>
    %c1_24 = arith.constant 1 : index
    %c0_25 = arith.constant 0 : index
    %c0_26 = arith.constant 0 : index
    %22 = vector.load %arg4[%c1_24, %c0_25, %c0_26] : memref<2x1x32xf32, #tpu.memory_space<vmem>>, vector<1x1x32xf32>
    %23 = vector.shape_cast %22 : vector<1x1x32xf32> to vector<1x32xf32>
    %c0_27 = arith.constant 0 : index
    %c1_28 = arith.constant 1 : index
    %c0_29 = arith.constant 0 : index
    %c0_30 = arith.constant 0 : index
    %24 = vector.load %arg2[%c0_27, %c1_28, %c0_29, %c0_30] : memref<2x2x8x16xf32, #tpu.memory_space<vmem>>, vector<1x1x8x16xf32>
    %25 = vector.shape_cast %24 : vector<1x1x8x16xf32> to vector<8x16xf32>
    %cst_31 = arith.constant dense<0.000000e+00> : vector<8x32xf32>
    %26 = tpu.matmul %25, %21, %cst_31 {dimension_numbers = #tpu.dot_dimension_numbers<[1], [0], [0], [1], [0, 0, 1, 1], [], []>} : vector<8x16xf32>, vector<16x32xf32>, vector<8x32xf32> -> vector<8x32xf32>
    %27 = vector.broadcast %23 : vector<1x32xf32> to vector<8x32xf32>
    %28 = arith.addf %26, %27 : vector<8x32xf32>
    %c0_32 = arith.constant 0 : index
    %c1_33 = arith.constant 1 : index
    %c0_34 = arith.constant 0 : index
    %c0_35 = arith.constant 0 : index
    %29 = vector.load %arg5[%c0_32, %c1_33, %c0_34, %c0_35] : memref<2x2x8x32xf32, #tpu.memory_space<vmem>>, vector<1x1x8x32xf32>
    %30 = vector.shape_cast %29 : vector<1x1x8x32xf32> to vector<8x32xf32>
    %31 = vector.shape_cast %28 : vector<8x32xf32> to vector<1x1x8x32xf32>
    tpu.vector_store %arg5[%c0_32, %c1_33, %c0_34, %c0_35], %31 {strides = array<i32>} : memref<2x2x8x32xf32, #tpu.memory_space<vmem>>, vector<1x1x8x32xf32>,
    %c1_36 = arith.constant 1 : index
    %c1_37 = arith.constant 1 : index
    %c0_38 = arith.constant 0 : index
    %c0_39 = arith.constant 0 : index
    %32 = vector.load %arg2[%c1_36, %c1_37, %c0_38, %c0_39] : memref<2x2x8x16xf32, #tpu.memory_space<vmem>>, vector<1x1x8x16xf32>
    %33 = vector.shape_cast %32 : vector<1x1x8x16xf32> to vector<8x16xf32>
    %cst_40 = arith.constant dense<0.000000e+00> : vector<8x32xf32>
    %34 = tpu.matmul %33, %21, %cst_40 {dimension_numbers = #tpu.dot_dimension_numbers<[1], [0], [0], [1], [0, 0, 1, 1], [], []>} : vector<8x16xf32>, vector<16x32xf32>, vector<8x32xf32> -> vector<8x32xf32>
    %35 = vector.broadcast %23 : vector<1x32xf32> to vector<8x32xf32>
    %36 = arith.addf %34, %35 : vector<8x32xf32>
    %c1_41 = arith.constant 1 : index
    %c1_42 = arith.constant 1 : index
    %c0_43 = arith.constant 0 : index
    %c0_44 = arith.constant 0 : index
    %37 = vector.load %arg5[%c1_41, %c1_42, %c0_43, %c0_44] : memref<2x2x8x32xf32, #tpu.memory_space<vmem>>, vector<1x1x8x32xf32>
    %38 = vector.shape_cast %37 : vector<1x1x8x32xf32> to vector<8x32xf32>
    %39 = vector.shape_cast %36 : vector<8x32xf32> to vector<1x1x8x32xf32>
    tpu.vector_store %arg5[%c1_41, %c1_42, %c0_43, %c0_44], %39 {strides = array<i32>} : memref<2x2x8x32xf32, #tpu.memory_space<vmem>>, vector<1x1x8x32xf32>,
    return
  }
  func.func @transform_0(%arg0: i32, %arg1: i32) -> (i32, i32, i32, i32) {
    %c0_i32 = arith.constant 0 : i32
    %c0_i32_0 = arith.constant 0 : i32
    %c0_i32_1 = arith.constant 0 : i32
    return %c0_i32, %arg0, %arg1, %c0_i32_0 : i32, i32, i32, i32
  }
  func.func @transform_1(%arg0: i32, %arg1: i32) -> (i32, i32, i32) {
    %c0_i32 = arith.constant 0 : i32
    %c0_i32_0 = arith.constant 0 : i32
    %c0_i32_1 = arith.constant 0 : i32
    return %arg0, %c0_i32, %c0_i32_0 : i32, i32, i32
  }
  func.func @transform_2(%arg0: i32, %arg1: i32) -> (i32, i32, i32) {
    %c0_i32 = arith.constant 0 : i32
    %c0_i32_0 = arith.constant 0 : i32
    %c0_i32_1 = arith.constant 0 : i32
    return %arg0, %c0_i32, %c0_i32_0 : i32, i32, i32
  }
  func.func @transform_3(%arg0: i32, %arg1: i32) -> (i32, i32, i32, i32) {
    %c0_i32 = arith.constant 0 : i32
    %c0_i32_0 = arith.constant 0 : i32
    %c0_i32_1 = arith.constant 0 : i32
    return %c0_i32, %arg0, %arg1, %c0_i32_0 : i32, i32, i32, i32
  }
}

</mosaic_0001>

<bundles_post_ra>
// kernel: tpu_custom_call.1
= control target key start
LH: loop header
LB: loop body
LE: loop exit
PB: predicated region body
PF: predicated region fallthrough
CT: control target
= control target key end

     0   :  { %s1072_s0 = inlined_call_operand.hbm [shape: f32[2,4,8,16], index: 0, kind: input, shape index: {}]   ;;  %s1073_s1 = inlined_call_operand.hbm [shape: f32[4,16,32], index: 1, kind: input, shape index: {}]   ;;  %s1074_s2 = inlined_call_operand.hbm [shape: f32[4,1,32], index: 2, kind: input, shape index: {}]   ;;  %s1075_s3 = inlined_call_operand.hbm [shape: f32[2,4,8,32], index: 3, kind: output, shape index: {}]  }
   0x1   :  { %1079 = sst [smem:[#allocation21_spill]] %s1072_s0 }
   0x2   :  { %8 = vsyncpa [#allocation3], 0 }
   0x3   :  { %10 = vsyncpa [#allocation3 + $0x1], 0 }
   0x4   :  { %11 = vsyncpa [#allocation6], 0 }
   0x5   :  { %13 = vsyncpa [#allocation6 + $0x1], 0 }
   0x6   :  { %14 = vsyncpa [#allocation4], 0 }
   0x7   :  { %16 = vsyncpa [#allocation4 + $0x1], 0  ;;  %s896_s12 = smov 0   ;;  %s898_s13 = smov 0  }
   0x8   :  { %s900_s14 = smov 0   ;;  %s902_s15 = smov 0  }
   0x9   :  { %s904_s16 = smov 0   ;;  %s906_s17 = smov 0  }
   0xa LB: > { %1080 = sst [smem:[#allocation17_spill]] %s845_s14  ;;  %s927_s18 = sadd.s32 4294967295, %s857_s17   ;;  %s857_s17 = sphi %s906_s17, %s22_s17   ;;  %s853_s16 = sphi %s904_s16, %s1096_s16   ;;  %s849_s15 = sphi %s902_s15, %s1095_s15   ;;  %s845_s14 = sphi %s900_s14, %s1091_s14   ;;  %s841_s13 = sphi %s898_s13, %s1094_s13   ;;  %s837_s12 = sphi %s896_s12, %s1093_s12  }
   0xb   : > { %s609_s19 = sadd.s32 4294967294, %s857_s17   ;;  %s34_s20 = sadd.s32 1, %s853_s16 }
   0xc   : > { %s43_s21 = sadd.s32 1, %s845_s14  ;;  %p36_p0 = scmp.ge.s32.totalorder %s34_s20, 2 }
   0xd   : > { %p50_p1 = scmp.ne.s32.totalorder %s845_s14, %s841_s13  ;;  %p51_p2 = scmp.eq.s32.totalorder %s857_s17, 0 }
   0xe   : > { %p56_p3 = scmp.ne.s32.totalorder %s841_s13, %s837_s12  ;;  %s1098_s20 = smov (%p36_p0, %s34_s20), 0 }
   0xf   : > { %1081 = sst [smem:[#allocation18_spill]] %s1098_s20  ;;  %p939_p4 = por %p51_p2, %p50_p1 }
  0x10   : > { %p57_p5 = scmp.eq.s32.totalorder %s927_s18, 0  ;;  %s38_s23 = ssub.s32 %s853_s16, %s1098_s20 }
  0x11   : > { %p134_p6 = scmp.eq.s32.totalorder %s927_s18, 1  ;;  %p41_p7 = scmp.eq.s32.totalorder %s38_s23, 0 }
  0x12   : > { %p947_p8 = por %p57_p5, %p56_p3  ;;  %p140_p10 = scmp.eq.s32.totalorder %s609_s19, 1 }
  0x13   : > { %p951_p9 = por %p134_p6, %p50_p1  ;;  %p611_p12 = scmp.ge.s32.totalorder %s857_s17, 2 }
  0x14   : > { %s956_s26 = scalar_select %p41_p7, %s845_s14, %s43_s21  }
  0x15   : > { %p958_p11 = por %p140_p10, %p56_p3  ;;  %156 = sbr.rel (%p611_p12) target bundleno = 51 (0x33), region = 16 }
  0x16   : > { %1085 = sst [smem:[#allocation19_spill]] %s956_s26 }
  0x17   : > { %s1086_s27 = scalar_select %p958_p11, 1, 0 }
  0x19   : > { %1087 = sst [smem:[#allocation20_spill]] %s1086_s27 }
  0x1a   : > { %s966_s28 = sand.u32 1, %s845_s14   ;;  %s646_s29 = sshll.u32 %s853_s16, 4 }
  0x1b   : > { %s612_s30 = sshll.u32 %s966_s28, 5  ;;  %s1088_s0 = sld [smem:[#allocation21_spill]] }
  0x1c   : > { %s650_s7 = scalar_select %p939_p4, [#allocation0], [#allocation13] }
  0x1d   : > { %s164_s9 = scalar_lea.vmem [#allocation2], %s612_s30  ;;  %s859_s19 = smov 512  }
  0x1e   : > { %s185_s10 = sshll.u32 %s164_s9, 4  ;;  %s175_s11 = sld [smem:[%s650_s7]]   ;;  %s186_s10 = int_to_ptr.vmem [resolvable:$true] %s185_s10 }
  0x1f   : > { %651 = sst [smem:[#allocation10]] (%p939_p4), %s859_s19  ;;  %s860_s21 = smov 256  }
  0x20   : > { %652 = sst [smem:[#allocation10 + $0x1]] (%p939_p4), %s860_s21  ;;  %s861_s23 = smov 2  }
  0x21   : > { %s170_s6 = scalar_lea.hbm %s1088_s0, %s646_s29  ;;  %653 = sst [smem:[#allocation10 + $0x2]] (%p939_p4), %s861_s23 }
  0x22   : > { %s183_s8 = sshll.u32 %s170_s6, 4  ;;  %s862_s29 = smov 128   ;;  %s184_s8 = int_to_ptr.hbm [resolvable:$true] %s183_s8 }
  0x23   : > { %654 = sst [smem:[#allocation10 + $0x3]] (%p939_p4), %s862_s29  ;;  %s863_s6 = smov 8  }
  0x24   : > { %s615_s4 = sshll.u32 %s175_s11, 26  ;;  %655 = sst [smem:[#allocation10 + $0x4]] (%p939_p4), %s862_s29 }
  0x25   : > { %s616_s5 = sadd.s32 134217728, %s615_s4  ;;  %656 = sst [smem:[#allocation10 + $0x5]] (%p939_p4), %s863_s6 }
  0x26   : > { %s161_s7 = scalar_lea.sflag [#allocation3], %s966_s28  ;;  %s864_s9 = smov [#allocation9]  }
  0x27   : > { %657 = dma.general (%p939_p4), %s184_s8, 512, %s186_s10, %s161_s7, %s864_s9, [#allocation10], %s616_s5, 0  }
  0x28   : > { %s208_s19 = sand.u32 1, %s857_s17   ;;  %s648_s21 = sshll.u32 %s853_s16, 5 }
  0x29   : > { %s218_s11 = scalar_lea.hbm %s1073_s1, %s648_s21  ;;  %s212_s29 = scalar_lea.vmem [#allocation5], %s612_s30 }
  0x2a   : > { %s221_s4 = sshll.u32 %s212_s29, 4  ;;  %s219_s20 = sshll.u32 %s218_s11, 4  ;;  %s222_s4 = int_to_ptr.vmem [resolvable:$true] %s221_s4  ;;  %s220_s20 = int_to_ptr.hbm [resolvable:$true] %s219_s20 }
  0x2b   : > { %s621_s6 = sshll.u32 %s966_s28, 1  ;;  %s209_s26 = scalar_lea.sflag [#allocation6], %s208_s19 }
  0x2c   : > { %s865_s8 = smov 128   ;;  %s866_s10 = smov 8  }
  0x2d   : > { %658 = dma.hbm_to_vmem [thread:$0]  (%p939_p4), %s220_s20, 512, %s222_s4, %s209_s26, %s865_s8, %s865_s8, %s866_s10  }
  0x2e   : > { %s622_s5 = sshll.u32 %s853_s16, 1  ;;  %s235_s27 = scalar_lea.vmem [#allocation7], %s621_s6 }
  0x2f   : > { %s239_s14 = scalar_lea.hbm %s1074_s2, %s622_s5  ;;  %s242_s0 = sshll.u32 %s235_s27, 4  ;;  %s243_s0 = int_to_ptr.vmem [resolvable:$true] %s242_s0 }
  0x30   : > { %s240_s21 = sshll.u32 %s239_s14, 4  ;;  %s867_s30 = smov 16   ;;  %s241_s21 = int_to_ptr.hbm [resolvable:$true] %s240_s21 }
  0x31   : > { %s868_s23 = smov 1  }
  0x32   : > { %659 = dma.hbm_to_vmem [thread:$0]  (%p939_p4), %s241_s21, 32, %s243_s0, %s209_s26, %s867_s30, %s867_s30, %s868_s23  }
  0x33 PF: > { %p623_p13 = scmp.ge.s32.totalorder %s857_s17, 1  ;;  %p250_p0 = scmp.lt.s32.totalorder %s857_s17, 3 }
  0x35   : > { %p251_p1 = pnand %p623_p13, %p250_p0 }
  0x36   : > { %s1007_s20 = sand.u32 (!%p251_p1), 1, %s841_s13  }
  0x37   : > { %254 = sbr.rel (%p251_p1) target bundleno = 215 (0xd7), region = 32  ;;  %s1010_s14 = sshll.u32 (!%p251_p1), %s1007_s20, 5 }
  0x38   : > { %s257_s27 = scalar_lea.sflag (!%p251_p1), [#allocation3], %s1007_s20  ;;  %s260_s28 = scalar_lea.vmem (!%p251_p1), [#allocation2], %s1010_s14 }
  0x3c   : > { %824 = dma.done.wait (%p947_p8), %s257_s27, 512  }
  0x3d   : > { %826 = vsyncadd (%p947_p8), %s257_s27, 4294966784  ;;  %s266_s22 = sand.u32 1, %s927_s18   ;;  %s270_s19 = scalar_lea.vmem [#allocation5], %s1010_s14 }
  0x3e   : > { %s267_s26 = scalar_lea.sflag [#allocation6], %s266_s22 }
  0x3f   : > { %828 = dma.done.wait (%p947_p8), %s267_s26, 544  }
  0x40   : > { %830 = vsyncadd (%p947_p8), %s267_s26, 4294966752  ;;  %s626_s11 = sshll.u32 %s1007_s20, 1  ;;  %v633_v0 = vld [vmem:[%s270_s19 + $0x18] sm:$0xff]  ;;  %v632_v1 = vld [vmem:[%s270_s19 + $0x10] sm:$0xff]  ;;  %vm325_vm0 = vcmask 130048   ;;  %vm349_vm1 = vcmask 261120  }
  0x41   : > { %405 = vmatpush.msra.mxu2 %v633_v0  ;;  %432 = vmatpush.msra.mxu3 %v633_v0  ;;  %v635_v2 = vld [vmem:[%s260_s28 + $0x8] sm:$0xff]  ;;  %v638_v3 = vld [vmem:[%s260_s28 + $0x18] sm:$0xff]  ;;  %v318_v5 = vld [vmem:[%s270_s19] sm:$0xff]  ;;  %s280_s18 = scalar_lea.vmem [#allocation7], %s626_s11  ;;  %s313_s24 = scalar_lea.vmem [#allocation8], %s1010_s14 }
  0x42   : > { %v319_v4 = vld [vmem:[%s270_s19 + $0x8] sm:$0xff]  ;;  %v321_v6 = vld [vmem:[%s260_s28] sm:$0xff]  ;;  %v629_v7 = vld [vmem:[%s260_s28 + $0x10] sm:$0xff]  ;;  %s441_s29 = scalar_lea.sflag [#allocation4], %s1007_s20 }
  0x43   : > { %343 = vmatpush.msra.mxu0 %v319_v4  ;;  %370 = vmatpush.msra.mxu1 %v319_v4  ;;  %v741_v8 = vld [vmem:[%s280_s18] ss:$0 sm:$0xff]  ;;  %v742_v13 = vld [vmem:[%s280_s18 + $0x1] ss:$0 sm:$0xff] }
  0x44   : > { %406 = vmatpush.msra.mxu2 %v632_v1  ;;  %433 = vmatpush.msra.mxu3 %v632_v1 }
  0x45   : > { %636 = vmatmul.msk.f32.vlgmr.msra.gmra.mxu2 %vm325_vm0, %v635_v2  ;;  %639 = vmatmul.msk.f32.vlgmr.msra.gmra.mxu3 %vm325_vm0, %v638_v3 }
  0x46   : > { %344 = vmatpush.msra.mxu0 %v318_v5  ;;  %371 = vmatpush.msra.mxu1 %v318_v5 }
  0x47   : > { %628 = vmatmul.msk.f32.vlgmr.msra.gmra.mxu0 %vm325_vm0, %v321_v6  ;;  %630 = vmatmul.msk.f32.vlgmr.msra.gmra.mxu1 %vm325_vm0, %v629_v7 }
  0xc4   : > { %v346_v9 = vpop.f32.mrf.mxu0  ;;  %v373_v10 = vpop.f32.mrf.mxu1 }
  0xc5   : > { %v347_v11 = vadd.f32 %v741_v8, %v346_v9  ;;  %v374_v12 = vadd.f32 %v741_v8, %v373_v10 }
  0xc7   : > { %350 = vst.msk [vmem:[%s313_s24] sm:$0xff] %vm349_vm1, %v347_v11 }
  0xc8   : > { %631 = vst.msk [vmem:[%s313_s24 + $0x10] sm:$0xff] %vm349_vm1, %v374_v12  ;;  %v408_v14 = vpop.f32.mrf.mxu2  ;;  %v435_v15 = vpop.f32.mrf.mxu3 }
  0xc9   : > { %v409_v16 = vadd.f32 %v742_v13, %v408_v14  ;;  %v436_v17 = vadd.f32 %v742_v13, %v435_v15 }
  0xcb   : > { %637 = vst.msk [vmem:[%s313_s24 + $0x8] sm:$0xff] %vm349_vm1, %v409_v16 }
  0xcc   : > { %640 = vst.msk [vmem:[%s313_s24 + $0x18] sm:$0xff] %vm349_vm1, %v436_v17 }
  0xcd   : > { %s649_s4 = sshll.u32 %s849_s15, 4  ;;  %s464_s6 = sshll.u32 %s313_s24, 4  ;;  %s465_s6 = int_to_ptr.vmem [resolvable:$true] %s464_s6 }
  0xce   : > { %s453_s5 = scalar_lea.hbm %s1075_s3, %s649_s4  ;;  %s869_s9 = smov 256  }
  0xcf   : > { %s466_s7 = sshll.u32 %s453_s5, 4  ;;  %663 = sst [smem:[#allocation12]] (%p951_p9), %s869_s9  ;;  %s467_s7 = int_to_ptr.hbm [resolvable:$true] %s466_s7 }
  0xd0   : > { %s870_s0 = smov 512   ;;  %s871_s21 = smov 2  }
  0xd1   : > { %664 = sst [smem:[#allocation12 + $0x1]] (%p951_p9), %s870_s0  ;;  %s872_s15 = smov 128  }
  0xd2   : > { %665 = sst [smem:[#allocation12 + $0x2]] (%p951_p9), %s871_s21  ;;  %s873_s30 = smov 8  }
  0xd3   : > { %666 = sst [smem:[#allocation12 + $0x3]] (%p951_p9), %s872_s15  ;;  %s874_s23 = smov [#allocation11]  }
  0xd4   : > { %667 = sst [smem:[#allocation12 + $0x4]] (%p951_p9), %s872_s15  ;;  %s875_s20 = smov 0  }
  0xd5   : > { %668 = sst [smem:[#allocation12 + $0x5]] (%p951_p9), %s873_s30 }
  0xd6   : > { %669 = dma.general (%p951_p9), %s465_s6, 512, %s467_s7, %s441_s29, %s874_s23, [#allocation12], %s875_s20, 0  }
  0xd7 PF: > { %s494_s27 = sand.u32 1, %s837_s12   ;;  %p672_p2 = pnand %p611_p12, %p958_p11 }
  0xd8   : > { %s495_s28 = scalar_lea.sflag [#allocation4], %s494_s27 }
  0xd9   : > { %p673_p3 = pneg %p672_p2 }
  0xdb   : > { %832 = dma.done.wait (%p673_p3), %s495_s28, 512  }
  0xdc   : > { %834 = vsyncadd (%p673_p3), %s495_s28, 4294966784  ;;  %s22_s17 = sadd.s32 1, %s857_s17   ;;  %s1090_s22 = sld [smem:[#allocation17_spill]] }
  0xdd   : > { %p19_p4 = scmp.ge.s32.totalorder %s22_s17, 4   ;;  %s1091_s14 = sld [smem:[#allocation19_spill]] }
  0xde   : > { %s1092_s25 = sld [smem:[#allocation18_spill]]  ;;  %s1093_s12 = smov %s841_s13 }
  0xdf   : > { %s1095_s15 = smov %s853_s16 }
  0xe0   :  { %21 = sbr.rel (!%p19_p4) target bundleno = 10 (0xa), region = 119 }
  0xe2   : > { %s1094_s13 = smov %s1090_s22 }
  0xe4   : > { %s1096_s16 = smov %s1092_s25 }
  0xe5   :  { %501 = vsyncpa [#allocation3], 1 }
  0xe6   :  { %503 = vsyncpa [#allocation3 + $0x1], 1 }
  0xe7   :  { %504 = vsyncpa [#allocation6], 1 }
  0xe8   :  { %506 = vsyncpa [#allocation6 + $0x1], 1 }
  0xe9   :  { %507 = vsyncpa [#allocation4], 1 }
  0xea   :  { %509 = vsyncpa [#allocation4 + $0x1], 1 }

</bundles_post_ra>
